<compile_context>
chip_gen: v6e
topology: v6e:2x2x1
jax: 0.10.0
libtpu: 0.0.40
codegen_flags: <defaults>
</compile_context>

<pallas_src>
import functools

import jax
import jax.numpy as jnp
from jax.experimental import pallas as pl
from jax.experimental.pallas import tpu as pltpu


# ----------------------------------------------------------------------------
# Kernels
# ----------------------------------------------------------------------------
def _normalize_fused_kernel(nphot_ref, img_ref, out_ref):
    # img_ref / out_ref: (bc, H*W) VMEM tiles; nphot_ref: (bc, 1) VMEM tile.
    imgf = img_ref[...].astype(jnp.float32)              # f32 accumulation
    sumhw = jnp.sum(imgf, axis=-1, keepdims=True)        # (bc, 1), XLU reduce
    factor = nphot_ref[...].astype(jnp.float32) / sumhw  # (bc, 1)
    out_ref[...] = (imgf * factor).astype(out_ref.dtype)  # broadcast scale


def _rowsum_kernel(img_ref, sum_ref, *, hw, mask_tail):
    # Pass 1 of the hw-tiled fallback: accumulate f32 row sums across hw tiles.
    k = pl.program_id(1)
    img = img_ref[...].astype(jnp.float32)                # (bc, thw)
    if mask_tail:
        # Ragged last hw tile: out-of-bounds columns hold unspecified data.
        thw = img.shape[-1]
        col = jax.lax.broadcasted_iota(jnp.int32, img.shape, 1)
        img = jnp.where(k * thw + col < hw, img, 0.0)
    part = jnp.sum(img, axis=-1, keepdims=True)            # (bc, 1)

    @pl.when(k == 0)
    def _():
        sum_ref[...] = jnp.zeros_like(sum_ref)

    sum_ref[...] += part


def _scale_kernel(nphot_ref, sum_ref, img_ref, out_ref):
    # Pass 2 of the hw-tiled fallback: per-row scale of each hw tile.
    factor = nphot_ref[...].astype(jnp.float32) / sum_ref[...]     # (bc, 1)
    out_ref[...] = (img_ref[...].astype(jnp.float32) * factor).astype(out_ref.dtype)


# ----------------------------------------------------------------------------
# Tuning helpers
# ----------------------------------------------------------------------------
def _sublane_multiple(dtype):
    itemsize = jnp.dtype(dtype).itemsize
    if itemsize >= 4:
        return 8
    if itemsize == 2:
        return 16
    return 32


def _tpu_tuning():
    """(target_block_bytes, vmem_limit_bytes) per TPU generation."""
    try:
        kind = jax.devices()[0].device_kind.lower()
    except Exception:  # pragma: no cover - defensive
        kind = ""
    if "v7" in kind:
        return 6 << 20, 48 << 20   # 3.2 TB/s HBM, 64 MiB physical VMEM
    if "v6" in kind:
        return 6 << 20, 64 << 20   # 128 MiB physical VMEM
    if "v5" in kind:
        return 2 << 20, 32 << 20   # scoped default is only 16 MiB
    return 4 << 20, 32 << 20


def _round_bc(rows, bc, sub):
    """Round the row-block size to the sublane granularity; prefer an exact
    divisor of rows with an even step count (balanced two-TC split, no ragged
    serial tail)."""
    if bc >= rows:
        return rows
    bc = max(sub, (bc // sub) * sub)
    lo = max(sub, (bc // 2 // sub) * sub)
    cands = list(range(bc, lo - 1, -sub))
    for cand in cands:
        if rows % cand == 0 and (rows // cand) % 2 == 0:
            return cand
    for cand in cands:
        if rows % cand == 0:
            return cand
    return bc


# ----------------------------------------------------------------------------
# hw-tiled fallback (very large H*W): two passes, f32 accumulator
# ----------------------------------------------------------------------------
def _normalize_hw_tiled(nph2d, img2d, rows, hw, itemsize, sub,
                        target_block_bytes, vmem_limit_bytes):
    bc = rows if rows <= sub else sub
    thw = (target_block_bytes // max(1, bc * itemsize)) // 128 * 128
    thw = max(128, thw)
    if thw >= hw:
        thw = hw
    n_row_blocks = pl.cdiv(rows, bc)
    n_hw_blocks = pl.cdiv(hw, thw)
    mask_tail = (thw < hw) and (hw % thw != 0)

    sums = pl.pallas_call(
        functools.partial(_rowsum_kernel, hw=hw, mask_tail=mask_tail),
        out_shape=jax.ShapeDtypeStruct((rows, 1), jnp.float32),
        grid_spec=pltpu.PrefetchScalarGridSpec(
            num_scalar_prefetch=0,
            grid=(n_row_blocks, n_hw_blocks),
            in_specs=[pl.BlockSpec((bc, thw), lambda i, k: (i, k))],
            out_specs=pl.BlockSpec((bc, 1), lambda i, k: (i, 0)),
        ),
        compiler_params=pltpu.CompilerParams(
            dimension_semantics=("parallel", "arbitrary"),
            vmem_limit_bytes=vmem_limit_bytes,
        ),
    )(img2d)

    out2d = pl.pallas_call(
        _scale_kernel,
        out_shape=jax.ShapeDtypeStruct((rows, hw), img2d.dtype),
        grid_spec=pltpu.PrefetchScalarGridSpec(
            num_scalar_prefetch=0,
            grid=(n_row_blocks, n_hw_blocks),
            in_specs=[
                pl.BlockSpec((bc, 1), lambda i, k: (i, 0)),    # nphotons
                pl.BlockSpec((bc, 1), lambda i, k: (i, 0)),    # row sums (f32)
                pl.BlockSpec((bc, thw), lambda i, k: (i, k)),  # image tile
            ],
            out_specs=pl.BlockSpec((bc, thw), lambda i, k: (i, k)),
        ),
        compiler_params=pltpu.CompilerParams(
            dimension_semantics=("parallel", "parallel"),
            vmem_limit_bytes=vmem_limit_bytes,
        ),
    )(nph2d, sums, img2d)
    return out2d


# ----------------------------------------------------------------------------
# Public wrapper
# ----------------------------------------------------------------------------
def normalize_photons(images, nphotons, *, target_block_bytes=None,
                      vmem_limit_bytes=None, force_hw_tiling=False):
    """images: [N, C, H, W]; nphotons: [N, C]. Returns normalized images."""
    N, C, H, W = images.shape
    assert nphotons.shape == (N, C)

    rows, hw = N * C, H * W
    img2d = images.reshape(rows, hw)       # free view for contiguous NCHW
    nph2d = nphotons.reshape(rows, 1)

    itemsize = jnp.dtype(images.dtype).itemsize
    row_bytes = hw * itemsize
    sub = _sublane_multiple(images.dtype)

    tb_default, vmem_default = _tpu_tuning()
    if target_block_bytes is None:
        target_block_bytes = tb_default
    if vmem_limit_bytes is None:
        vmem_limit_bytes = vmem_default

    # If even the minimum-height row block (double-buffered in+out ~ 4x block)
    # would exceed the VMEM budget, tile the hw axis too.
    min_bc = rows if rows <= sub else sub
    needs_hw_tiling = force_hw_tiling or (
        4 * min_bc * row_bytes > (vmem_limit_bytes * 3) // 4)

    if needs_hw_tiling:
        out2d = _normalize_hw_tiled(nph2d, img2d, rows, hw, itemsize, sub,
                                    target_block_bytes, vmem_limit_bytes)
        return out2d.reshape(N, C, H, W)

    # --- fused single-pass path -------------------------------------------
    total_bytes = rows * row_bytes
    bc = max(1, target_block_bytes // row_bytes)
    if total_bytes > (2 << 20):
        # Never let the grid collapse to ~1 step on non-trivial data: with
        # >= ~4 steps the writeback of block i-1 overlaps the fetch of i+1.
        bc = min(bc, max(1, rows // 4))
    # Hard VMEM safety cap (double-buffered in+out ~ 4x block).
    bc_vmem_cap = ((vmem_limit_bytes * 3) // 4) // (4 * row_bytes)
    bc = min(bc, max(1, bc_vmem_cap))
    bc = _round_bc(rows, bc, sub)
    grid = (pl.cdiv(rows, bc),)            # ragged last block is masked

    out2d = pl.pallas_call(
        _normalize_fused_kernel,
        out_shape=jax.ShapeDtypeStruct((rows, hw), images.dtype),
        grid_spec=pltpu.PrefetchScalarGridSpec(
            num_scalar_prefetch=0,
            grid=grid,
            in_specs=[
                pl.BlockSpec((bc, 1), lambda i: (i, 0)),    # nphotons column
                pl.BlockSpec((bc, hw), lambda i: (i, 0)),   # image rows
            ],
            out_specs=pl.BlockSpec((bc, hw), lambda i: (i, 0)),
        ),
        compiler_params=pltpu.CompilerParams(
            dimension_semantics=("parallel",),
            vmem_limit_bytes=vmem_limit_bytes,
        ),
        cost_estimate=pl.CostEstimate(
            flops=2 * rows * hw,
            transcendentals=0,
            bytes_accessed=2 * rows * hw * itemsize
            + rows * jnp.dtype(nphotons.dtype).itemsize,
        ),
    )(nph2d, img2d)

    return out2d.reshape(N, C, H, W)


# ----------------------------------------------------------------------------
# Reference + checks
# ----------------------------------------------------------------------------
def normalize_photons_ref(images, nphotons):
    imgf = images.astype(jnp.float32)
    sumhw = imgf.sum(axis=(2, 3))
    normfactor = nphotons.astype(jnp.float32) / sumhw
    return (imgf * normfactor[:, :, None, None]).astype(images.dtype)


def _check(images, nphotons, rtol=1e-5, atol=1e-5, **kw):
    out = jax.block_until_ready(normalize_photons(images, nphotons, **kw))
    ref = normalize_photons_ref(images, nphotons)
    assert out.shape == ref.shape and out.dtype == ref.dtype
    assert jnp.allclose(out.astype(jnp.float32), ref.astype(jnp.float32),
                        rtol=rtol, atol=atol), "mismatch vs reference"


if __name__ == "__main__":
    key = jax.random.PRNGKey(0)
    ks = jax.random.split(key, 10)

    # 1) Module-spec small shape (single full block, fused path).
    images = jax.random.uniform(ks[0], (2, 4, 16, 16), dtype=jnp.float32) + 0.1
    nphot = jax.random.uniform(ks[1], (2, 4), dtype=jnp.float32) * 1000.0 + 100.0
    _check(images, nphot)

    # 2) Fused multi-step grid (even split -> 2 pipelined steps).
    images2 = jax.random.uniform(ks[2], (4, 4, 32, 32), dtype=jnp.float32) + 0.1
    nphot2 = jax.random.uniform(ks[3], (4, 4), dtype=jnp.float32) * 500.0 + 50.0
    _check(images2, nphot2, target_block_bytes=8 * 32 * 32 * 4)

    # 3) Fused path with a ragged (masked) last row block: rows=15, bc=8.
    images3 = jax.random.uniform(ks[4], (3, 5, 16, 16), dtype=jnp.float32) + 0.1
    nphot3 = jax.random.uniform(ks[5], (3, 5), dtype=jnp.float32) * 500.0 + 50.0
    _check(images3, nphot3, target_block_bytes=8 * 16 * 16 * 4)

    # 4) hw-tiled fallback path (forced), including a partial masked hw tile.
    images4 = jax.random.uniform(ks[6], (2, 3, 16, 20), dtype=jnp.float32) + 0.1
    nphot4 = jax.random.uniform(ks[7], (2, 3), dtype=jnp.float32) * 500.0 + 50.0
    _check(images4, nphot4, target_block_bytes=8 * 128 * 4, force_hw_tiling=True)

    # 5) bf16 images (f32 in-kernel accumulation, dtype-aware rounding).
    images5 = (jax.random.uniform(ks[8], (2, 4, 16, 16), dtype=jnp.float32)
               + 0.1).astype(jnp.bfloat16)
    nphot5 = jax.random.uniform(ks[9], (2, 4), dtype=jnp.float32) * 1000.0 + 100.0
    _check(images5, nphot5, rtol=2e-2, atol=2e-2)

    print("KERNEL_OK")
</pallas_src>

<mosaic_0001>
module attributes {stable_mosaic.version = 11 : i64} {
  func.func @_normalize_fused_kernel(%arg0: i32, %arg1: memref<8x1xf32, #tpu.memory_space<vmem>>, %arg2: memref<8x256xf32, #tpu.memory_space<vmem>>, %arg3: memref<8x256xf32, #tpu.memory_space<vmem>>) attributes {dimension_semantics = [#tpu.dimension_semantics<parallel>], iteration_bounds = array<i64: 1>, scalar_prefetch = 0 : i64, scratch_operands = 0 : i64, tpu.core_type = #tpu.core_type<tc>, window_params = [{transform_indices = @transform_0, window_bounds = array<i64: 8, 1>}, {transform_indices = @transform_1, window_bounds = array<i64: 8, 256>}, {transform_indices = @transform_2, window_bounds = array<i64: 8, 256>}]} {
    %c0 = arith.constant 0 : index
    %c0_0 = arith.constant 0 : index
    %0 = vector.load %arg2[%c0, %c0_0] : memref<8x256xf32, #tpu.memory_space<vmem>>, vector<8x256xf32>
    %cst = arith.constant dense<0.000000e+00> : vector<8xf32>
    %1 = vector.multi_reduction <add>, %0, %cst [1] : vector<8x256xf32> to vector<8xf32>
    %2 = vector.shape_cast %1 : vector<8xf32> to vector<8x1xf32>
    %c0_1 = arith.constant 0 : index
    %c0_2 = arith.constant 0 : index
    %3 = vector.load %arg1[%c0_1, %c0_2] : memref<8x1xf32, #tpu.memory_space<vmem>>, vector<8x1xf32>
    %4 = arith.divf %3, %2 : vector<8x1xf32>
    %5 = vector.broadcast %4 : vector<8x1xf32> to vector<8x256xf32>
    %6 = arith.mulf %0, %5 : vector<8x256xf32>
    %c0_3 = arith.constant 0 : index
    %c0_4 = arith.constant 0 : index
    %7 = vector.load %arg3[%c0_3, %c0_4] : memref<8x256xf32, #tpu.memory_space<vmem>>, vector<8x256xf32>
    tpu.vector_store %arg3[%c0_3, %c0_4], %6 {strides = array<i32>} : memref<8x256xf32, #tpu.memory_space<vmem>>, vector<8x256xf32>,
    return
  }
  func.func @transform_0(%arg0: i32) -> (i32, i32) {
    %c0_i32 = arith.constant 0 : i32
    %c0_i32_0 = arith.constant 0 : i32
    return %arg0, %c0_i32 : i32, i32
  }
  func.func @transform_1(%arg0: i32) -> (i32, i32) {
    %c0_i32 = arith.constant 0 : i32
    %c0_i32_0 = arith.constant 0 : i32
    return %arg0, %c0_i32 : i32, i32
  }
  func.func @transform_2(%arg0: i32) -> (i32, i32) {
    %c0_i32 = arith.constant 0 : i32
    %c0_i32_0 = arith.constant 0 : i32
    return %arg0, %c0_i32 : i32, i32
  }
}

</mosaic_0001>

<bundles_post_ra>
// kernel: tpu_custom_call.1
= control target key start
LH: loop header
LB: loop body
LE: loop exit
PB: predicated region body
PF: predicated region fallthrough
CT: control target
= control target key end

     0   :  { %7 = vsyncpa [#allocation3], 0  ;;  %s133_s0 = inlined_call_operand.vmem [shape: f32[8,1], index: 0, kind: input, shape index: {}]   ;;  %s134_s1 = inlined_call_operand.hbm [shape: f32[8,256], index: 1, kind: input, shape index: {}]   ;;  %s135_s2 = inlined_call_operand.hbm [shape: f32[8,256], index: 2, kind: output, shape index: {}]  }
   0x1   :  { %8 = vsyncpa [#allocation4], 0  ;;  %s106_s9 = smov [#allocation2]  }
   0x2   :  { %s17_s10 = sshll.u32 %s106_s9, 4  ;;  %s18_s10 = int_to_ptr.vmem [resolvable:$true] %s17_s10 }
   0x3   :  { %s70_s11 = scalar_lea.vmem %s18_s10, 256  ;;  %p75_p1 = scmp.lt.s32.totalorder %s18_s10, %s18_s10 }
   0x4   :  { %p71_p0 = scmp.ne.s32.totalorder %s18_s10, %s70_s11  ;;  %p76_p2 = scmp.lt.s32.totalorder %s70_s11, %s70_s11 }
   0x6   :  { %p77_p3 = por %p76_p2, %p75_p1 }
   0x8   :  { %p78_p4 = pnand %p77_p3, %p71_p0 }
   0xa   :  { %81 = shalt.err (!%p78_p4)
}
   0xb   :  { %20 = dma.hbm_to_vmem [thread:$0]  %s134_s1, 256, %s18_s10, [#allocation3]  }
   0xc   :  { %102 = dma.done.wait [#allocation3], 256  }
   0xd   :  { %103 = vsyncadd [#allocation3], 4294967040  ;;  %v24_v0 = vld [vmem:[#allocation2] sm:$0xff]  ;;  %v25_v1 = vld [vmem:[#allocation2 + $0x8] sm:$0xff]  ;;  %v107_v3 = vmov 0   ;;  %s108_s16 = smov [#allocation5]  }
   0xe   :  { %v26_v2 = vadd.f32 %v25_v1, %v24_v0  ;;  %59 = vset.pattern.permute.xlu0 %v107_v3  ;;  %v29_v5 = vld [vmem:[%s133_s0] sm:$0xff]  ;;  %s47_s17 = sshll.u32 %s108_s16, 4  ;;  %s48_s17 = int_to_ptr.vmem [resolvable:$true] %s47_s17 }
   0xf   :  { %s82_s1 = scalar_lea.vmem %s48_s17, 256  ;;  %p87_p6 = scmp.lt.s32.totalorder %s48_s17, %s48_s17 }
  0x10   :  { %27 = vadd.xlane.f32.xlu0 %v26_v2  ;;  %p83_p5 = scmp.ne.s32.totalorder %s48_s17, %s82_s1  ;;  %p88_p7 = scmp.lt.s32.totalorder %s82_s1, %s82_s1 }
  0x12   :  { %p89_p8 = por %p88_p7, %p87_p6 }
  0x14   :  { %p90_p9 = pnand %p89_p8, %p83_p5 }
  0x99   :  { %v28_v4 = vpop.xlane.xlu0 %27 }
  0x9a   :  { %60 = vrcp.f32 %v28_v4 }
  0xa7   :  { %v61_v6 = vpop.eup %60 }
  0xa8   :  { %v31_v7 = vmul.f32 %v61_v6, %v29_v5 }
  0xaa   :  { %34 = vperm.xlu0 %59, %v31_v7  }
 0x125   :  { %v35_v8 = vpop.permute.xlu0 %34 }
 0x126   :  { %v37_v9 = vmul.f32 %v35_v8, %v24_v0  ;;  %v38_v10 = vmul.f32 %v35_v8, %v25_v1 }
 0x128   :  { %39 = vst [vmem:[#allocation5] sm:$0xff] %v37_v9  ;;  %40 = vst [vmem:[#allocation5 + $0x8] sm:$0xff] %v38_v10 }
 0x129   :  { %93 = shalt.err (!%p90_p9)
}
 0x12a   :  { %50 = dma.vmem_to_hbm [thread:$0]  %s48_s17, 256, %s135_s2, [#allocation4]  }
 0x12b   :  { %104 = dma.done.wait [#allocation4], 256  }
 0x12c   :  { %105 = vsyncadd [#allocation4], 4294967040 }
 0x12d   :  { %54 = vsyncpa [#allocation3], 1 }
 0x12e   :  { %55 = vsyncpa [#allocation4], 1 }

</bundles_post_ra>
